<compile_context>
chip_gen: v6e
topology: v6e:2x2x1
jax: 0.10.0
libtpu: 0.0.40
codegen_flags: <defaults>
</compile_context>

<pallas_src>
import functools

import jax
import jax.numpy as jnp
from jax.experimental import pallas as pl
from jax.experimental.pallas import tpu as pltpu

IN_F = 13
HID = 128
OUT_F = 2


def _round_up(n, m):
    return ((n + m - 1) // m) * m


def mlp_kernel(xt_ref, w1_ref, b1_ref, w2_ref, b2_ref, ot_ref):
    # Feature-major tiles (batch on the lane axis):
    #   xt : (13,  TB) bf16      w1 : (128, 13) f32   b1 : (128, 1) f32
    #   w2 : (2,  128) f32       b2 : (2,   1) f32    out: (2,  TB) f32
    x = xt_ref[...]                                            # (13, TB) bf16
    w1 = w1_ref[...].astype(jnp.bfloat16)                      # (128, 13) bf16
    # First matmul on the MXU, f32 accumulation.
    h = jnp.dot(w1, x, preferred_element_type=jnp.float32)     # (128, TB) f32
    # Bias + ReLU epilogue in f32 (cheap VPU work; v5e has no bf16 VPU).
    h = jnp.maximum(h + b1_ref[...], 0.0)
    # Second matmul: bf16 x bf16 (avoids multi-pass f32 MXU emulation),
    # f32 accumulation.  M=2, so this is nearly free in feature-major form.
    w2 = w2_ref[...].astype(jnp.bfloat16)                      # (2, 128) bf16
    y = jnp.dot(w2, h.astype(jnp.bfloat16),
                preferred_element_type=jnp.float32)            # (2, TB) f32
    ot_ref[...] = y + b2_ref[...]


@functools.partial(jax.jit, static_argnames=("tile_b",))
def net_forward(x, w1, b1, w2, b2, *, tile_b=16384):
    """Forward pass of `Net`.

    x : (B, 13) f32
    w1: (128, 13) f32  (fc1.weight, PyTorch (out, in) layout)
    b1: (128,)   f32   (fc1.bias)
    w2: (2, 128) f32   (fc2.weight)
    b2: (2,)     f32   (fc2.bias)
    Returns (B, 2) f32.
    """
    B = x.shape[0]

    # Batch tile: as large as possible (the kernel is per-step-overhead bound
    # at small tiles), multiple of 256 for clean MXU/lane tiling, and at least
    # 2 grid steps when the batch allows (v7x has 2 TensorCores).  Small
    # batches fall back to a single full-extent block (always a legal block).
    if B <= 256:
        tb = B
    else:
        tb = min(tile_b, _round_up(pl.cdiv(B, 2), 256))
    grid = (pl.cdiv(B, tb),)   # partial last block handled by Pallas; no jnp.pad

    # Feature-major presentation: batch moves to the lane axis.  The bf16 cast
    # rides the (required) transpose pass -- no standalone cast pass over x.
    xt = x.T.astype(jnp.bfloat16)                      # (13, B) bf16
    b1c = b1.reshape(HID, 1).astype(jnp.float32)       # (128, 1)
    b2c = b2.reshape(OUT_F, 1).astype(jnp.float32)     # (2, 1)

    out_t = pl.pallas_call(
        mlp_kernel,
        out_shape=jax.ShapeDtypeStruct((OUT_F, B), jnp.float32),
        grid=grid,
        in_specs=[
            pl.BlockSpec((IN_F, tb), lambda i: (0, i)),    # streamed x tiles
            pl.BlockSpec((HID, IN_F), lambda i: (0, 0)),   # W1: VMEM-resident
            pl.BlockSpec((HID, 1), lambda i: (0, 0)),      # b1: VMEM-resident
            pl.BlockSpec((OUT_F, HID), lambda i: (0, 0)),  # W2: VMEM-resident
            pl.BlockSpec((OUT_F, 1), lambda i: (0, 0)),    # b2: VMEM-resident
        ],
        out_specs=pl.BlockSpec((OUT_F, tb), lambda i: (0, i)),  # lane-dense out
        compiler_params=pltpu.CompilerParams(
            dimension_semantics=("parallel",),
            # ~1.5 KB VMEM per batch row at TB=16384 (~24 MiB peak incl. the
            # (128, TB) f32 intermediate); keep headroom under v7x's 64 MiB/TC.
            vmem_limit_bytes=48 * 1024 * 1024,
        ),
    )(xt, w1, b1c, w2, b2c)
    return out_t.T                                      # (B, 2) f32


def init_params(key):
    # PyTorch nn.Linear default init: U(-1/sqrt(fan_in), 1/sqrt(fan_in)),
    # weights stored in PyTorch's (out, in) layout.
    k1, k2, k3, k4 = jax.random.split(key, 4)
    bound1 = 1.0 / jnp.sqrt(IN_F)
    bound2 = 1.0 / jnp.sqrt(HID)
    w1 = jax.random.uniform(k1, (HID, IN_F), jnp.float32, -bound1, bound1)
    b1 = jax.random.uniform(k2, (HID,), jnp.float32, -bound1, bound1)
    w2 = jax.random.uniform(k3, (OUT_F, HID), jnp.float32, -bound2, bound2)
    b2 = jax.random.uniform(k4, (OUT_F,), jnp.float32, -bound2, bound2)
    return w1, b1, w2, b2


def reference(x, w1, b1, w2, b2):
    # Pure-JAX reference mirroring the kernel's dtypes: bf16 operands into both
    # matmuls, f32 accumulation, f32 bias/ReLU epilogue.
    xb = x.astype(jnp.bfloat16).astype(jnp.float32)
    w1b = w1.astype(jnp.bfloat16).astype(jnp.float32)
    h = jnp.maximum(jnp.dot(xb, w1b.T, precision="highest") + b1, 0.0)
    hb = h.astype(jnp.bfloat16).astype(jnp.float32)
    w2b = w2.astype(jnp.bfloat16).astype(jnp.float32)
    return jnp.dot(hb, w2b.T, precision="highest") + b2


if __name__ == "__main__":
    key = jax.random.PRNGKey(0)
    kx, kp = jax.random.split(key)
    w1, b1, w2, b2 = init_params(kp)

    # Small demo batch (single full-extent block).
    B = 8
    x = jax.random.normal(kx, (B, IN_F), jnp.float32)
    out = net_forward(x, w1, b1, w2, b2)
    jax.block_until_ready(out)
    ref = reference(x, w1, b1, w2, b2)
    assert out.shape == (B, OUT_F)
    assert jnp.allclose(out, ref, atol=1e-2, rtol=1e-2)

    # Larger ragged batch: multi-step pipelined grid with a partial last block
    # (tile_b=512 -> grid of 2 steps, last block covers 488 of 512 columns).
    B2 = 1000
    x2 = jax.random.normal(jax.random.PRNGKey(1), (B2, IN_F), jnp.float32)
    out2 = net_forward(x2, w1, b1, w2, b2, tile_b=512)
    jax.block_until_ready(out2)
    ref2 = reference(x2, w1, b1, w2, b2)
    assert out2.shape == (B2, OUT_F)
    assert jnp.allclose(out2, ref2, atol=1e-2, rtol=1e-2)

    print("KERNEL_OK")
</pallas_src>

<mosaic_0001>
module attributes {stable_mosaic.version = 11 : i64} {
  func.func @mlp_kernel(%arg0: i32, %arg1: memref<13x8xbf16, #tpu.memory_space<vmem>>, %arg2: memref<128x13xf32, #tpu.memory_space<vmem>>, %arg3: memref<128x1xf32, #tpu.memory_space<vmem>>, %arg4: memref<2x128xf32, #tpu.memory_space<vmem>>, %arg5: memref<2x1xf32, #tpu.memory_space<vmem>>, %arg6: memref<2x8xf32, #tpu.memory_space<vmem>>) attributes {dimension_semantics = [#tpu.dimension_semantics<parallel>], iteration_bounds = array<i64: 1>, scalar_prefetch = 0 : i64, scratch_operands = 0 : i64, tpu.core_type = #tpu.core_type<tc>, window_params = [{transform_indices = @transform_0, window_bounds = array<i64: 13, 8>}, {pipeline_mode = #tpu.pipeline_mode<synchronous>, transform_indices = @transform_1, window_bounds = array<i64: 128, 13>}, {pipeline_mode = #tpu.pipeline_mode<synchronous>, transform_indices = @transform_2, window_bounds = array<i64: 128, 1>}, {pipeline_mode = #tpu.pipeline_mode<synchronous>, transform_indices = @transform_3, window_bounds = array<i64: 2, 128>}, {pipeline_mode = #tpu.pipeline_mode<synchronous>, transform_indices = @transform_4, window_bounds = array<i64: 2, 1>}, {transform_indices = @transform_5, window_bounds = array<i64: 2, 8>}]} {
    %c0 = arith.constant 0 : index
    %c0_0 = arith.constant 0 : index
    %0 = vector.load %arg1[%c0, %c0_0] : memref<13x8xbf16, #tpu.memory_space<vmem>>, vector<13x8xbf16>
    %c0_1 = arith.constant 0 : index
    %c0_2 = arith.constant 0 : index
    %1 = vector.load %arg2[%c0_1, %c0_2] : memref<128x13xf32, #tpu.memory_space<vmem>>, vector<128x13xf32>
    %2 = arith.truncf %1 : vector<128x13xf32> to vector<128x13xbf16>
    %cst = arith.constant dense<0.000000e+00> : vector<128x8xf32>
    %3 = tpu.matmul %2, %0, %cst {dimension_numbers = #tpu.dot_dimension_numbers<[1], [0], [0], [1], [0, 0, 1, 1], [], []>} : vector<128x13xbf16>, vector<13x8xbf16>, vector<128x8xf32> -> vector<128x8xf32>
    %c0_3 = arith.constant 0 : index
    %c0_4 = arith.constant 0 : index
    %4 = vector.load %arg3[%c0_3, %c0_4] : memref<128x1xf32, #tpu.memory_space<vmem>>, vector<128x1xf32>
    %5 = vector.broadcast %4 : vector<128x1xf32> to vector<128x8xf32>
    %6 = arith.addf %3, %5 : vector<128x8xf32>
    %cst_5 = arith.constant 0.000000e+00 : f32
    %7 = vector.broadcast %cst_5 : f32 to vector<128x8xf32>
    %8 = arith.maximumf %6, %7 : vector<128x8xf32>
    %c0_6 = arith.constant 0 : index
    %c0_7 = arith.constant 0 : index
    %9 = vector.load %arg4[%c0_6, %c0_7] : memref<2x128xf32, #tpu.memory_space<vmem>>, vector<2x128xf32>
    %10 = arith.truncf %9 : vector<2x128xf32> to vector<2x128xbf16>
    %11 = arith.truncf %8 : vector<128x8xf32> to vector<128x8xbf16>
    %cst_8 = arith.constant dense<0.000000e+00> : vector<2x8xf32>
    %12 = tpu.matmul %10, %11, %cst_8 {dimension_numbers = #tpu.dot_dimension_numbers<[1], [0], [0], [1], [0, 0, 1, 1], [], []>} : vector<2x128xbf16>, vector<128x8xbf16>, vector<2x8xf32> -> vector<2x8xf32>
    %c0_9 = arith.constant 0 : index
    %c0_10 = arith.constant 0 : index
    %13 = vector.load %arg5[%c0_9, %c0_10] : memref<2x1xf32, #tpu.memory_space<vmem>>, vector<2x1xf32>
    %14 = vector.broadcast %13 : vector<2x1xf32> to vector<2x8xf32>
    %15 = arith.addf %12, %14 : vector<2x8xf32>
    %c0_11 = arith.constant 0 : index
    %c0_12 = arith.constant 0 : index
    %16 = vector.load %arg6[%c0_11, %c0_12] : memref<2x8xf32, #tpu.memory_space<vmem>>, vector<2x8xf32>
    tpu.vector_store %arg6[%c0_11, %c0_12], %15 {strides = array<i32>} : memref<2x8xf32, #tpu.memory_space<vmem>>, vector<2x8xf32>,
    return
  }
  func.func @transform_0(%arg0: i32) -> (i32, i32) {
    %c0_i32 = arith.constant 0 : i32
    %c0_i32_0 = arith.constant 0 : i32
    return %c0_i32, %arg0 : i32, i32
  }
  func.func @transform_1(%arg0: i32) -> (i32, i32) {
    %c0_i32 = arith.constant 0 : i32
    %c0_i32_0 = arith.constant 0 : i32
    %c0_i32_1 = arith.constant 0 : i32
    return %c0_i32, %c0_i32_0 : i32, i32
  }
  func.func @transform_2(%arg0: i32) -> (i32, i32) {
    %c0_i32 = arith.constant 0 : i32
    %c0_i32_0 = arith.constant 0 : i32
    %c0_i32_1 = arith.constant 0 : i32
    return %c0_i32, %c0_i32_0 : i32, i32
  }
  func.func @transform_3(%arg0: i32) -> (i32, i32) {
    %c0_i32 = arith.constant 0 : i32
    %c0_i32_0 = arith.constant 0 : i32
    %c0_i32_1 = arith.constant 0 : i32
    return %c0_i32, %c0_i32_0 : i32, i32
  }
  func.func @transform_4(%arg0: i32) -> (i32, i32) {
    %c0_i32 = arith.constant 0 : i32
    %c0_i32_0 = arith.constant 0 : i32
    %c0_i32_1 = arith.constant 0 : i32
    return %c0_i32, %c0_i32_0 : i32, i32
  }
  func.func @transform_5(%arg0: i32) -> (i32, i32) {
    %c0_i32 = arith.constant 0 : i32
    %c0_i32_0 = arith.constant 0 : i32
    return %c0_i32, %arg0 : i32, i32
  }
}

</mosaic_0001>

<bundles_post_ra>
// kernel: net_forward.1
= control target key start
LH: loop header
LB: loop body
LE: loop exit
PB: predicated region body
PF: predicated region fallthrough
CT: control target
= control target key end

     0   :  { %vm174_vm0 = vcmask 1045504   ;;  %vm175_vm1 = vcmask 1046528   ;;  %vm149_vm2 = vcmask 105472   ;;  %v461_v3 = vmov 65535   ;;  %s630_s0 = inlined_call_operand.vmem [shape: bf16[13,8], index: 0, kind: input, shape index: {}]   ;;  %s631_s1 = inlined_call_operand.vmem [shape: f32[128,13], index: 1, kind: input, shape index: {}]   ;;  %s632_s2 = inlined_call_operand.vmem [shape: f32[128,1], index: 2, kind: input, shape index: {}]   ;;  %s633_s3 = inlined_call_operand.vmem [shape: f32[2,128], index: 3, kind: input, shape index: {}]   ;;  %s634_s4 = inlined_call_operand.vmem [shape: f32[2,1], index: 4, kind: input, shape index: {}]   ;;  %s635_s5 = inlined_call_operand.hbm [shape: f32[2,8], index: 5, kind: output, shape index: {}]  }
   0x1   :  { %v438_v0 = vld [vmem:[%s630_s0] sm:$0x7f]   ;;  %v25_v2 = vld [vmem:[%s631_s1 + $0x8] sm:$0xff]  ;;  %v176_v4 = vsel %vm174_vm0, 4294967295, %v461_v3  ;;  %v26_v7 = vld [vmem:[%s631_s1 + $0x10] sm:$0xff]  ;;  %v462_v9 = vmov 0  }
   0x2   :  { %v24_v1 = vld [vmem:[%s631_s1] sm:$0xff]  ;;  %v177_v6 = vsel %vm175_vm1, %v176_v4, 0  ;;  %v27_v8 = vld [vmem:[%s631_s1 + $0x18] sm:$0xff]  ;;  %436 = vset.pattern.permute.xlu0 %v462_v9  ;;  %437 = vset.pattern.permute.xlu1 %v462_v9  ;;  %v29_v12 = vld [vmem:[%s631_s1 + $0x28] sm:$0xff] }
   0x3   :  { %v40_v5 = vpack.c.bf16 %v25_v2, %v24_v1  ;;  %v179_v10 = vand.u32 %v438_v0, %v177_v6  ;;  %v28_v11 = vld [vmem:[%s631_s1 + $0x20] sm:$0xff]  ;;  %v41_v13 = vpack.c.bf16 %v27_v8, %v26_v7  ;;  %v62_v14 = vld [vmem:[%s632_s2 + $0x70] sm:$0xff]  ;;  %v63_v17 = vld [vmem:[%s632_s2 + $0x78] sm:$0xff] }
   0x4   :  { %v42_v15 = vpack.c.bf16 %v29_v12, %v28_v11  ;;  %136 = vperm.xlu0 %436, %v62_v14   ;;  %v60_v16 = vld [vmem:[%s632_s2 + $0x60] sm:$0xff]  ;;  %v61_v18 = vld [vmem:[%s632_s2 + $0x68] sm:$0xff]  ;;  %v30_v19 = vld [vmem:[%s631_s1 + $0x30] sm:$0xff] }
   0x5   :  { %395 = vmatprep.mubr.msk.bf16.mxu0 %vm149_vm2, %v40_v5  ;;  %393 = vmatprep.subr.bf16.mxu0 %v179_v10  ;;  %v31_v20 = vld [vmem:[%s631_s1 + $0x38] sm:$0xff]  ;;  %v32_v21 = vld [vmem:[%s631_s1 + $0x40] sm:$0xff]  ;;  %v33_v22 = vld [vmem:[%s631_s1 + $0x48] sm:$0xff] }
   0x6   :  { %394 = vmatpush3.bf16.msra.mxu0 %v179_v10  ;;  %126 = vperm.xlu1 %437, %v60_v16   ;;  %v58_v23 = vld [vmem:[%s632_s2 + $0x50] sm:$0xff] }
   0x8   :  { %141 = vperm.xlu0 %436, %v63_v17  }
   0x9   :  { %396 = vmatmul.mubr.msk.bf16.vlgmr.msra.gmra.mxu0 %vm149_vm2, %v41_v13 }
   0xa   :  { %399 = vmatprep.mubr.msk.bf16.mxu0 %vm149_vm2, %v42_v15  ;;  %131 = vperm.xlu1 %437, %v61_v18  }
   0xb   :  { %10 = vsyncpa [#allocation3], 0  ;;  %v59_v24 = vld [vmem:[%s632_s2 + $0x58] sm:$0xff]  ;;  %v43_v25 = vpack.c.bf16 %v31_v20, %v30_v19  ;;  %v44_v26 = vpack.c.bf16 %v33_v22, %v32_v21  ;;  %v56_v27 = vld [vmem:[%s632_s2 + $0x40] sm:$0xff]  ;;  %v463_v47 = vmov 0.0   ;;  %vm464_vm3 = vmmov 0  }
   0xc   :  { %116 = vperm.xlu0 %436, %v58_v23   ;;  %v57_v28 = vld [vmem:[%s632_s2 + $0x48] sm:$0xff]  ;;  %v34_v29 = vld [vmem:[%s631_s1 + $0x50] sm:$0xff]  ;;  %v35_v30 = vld [vmem:[%s631_s1 + $0x58] sm:$0xff]  ;;  %411 = vmatprep.subr.bf16.mxu1 %v463_v47  ;;  %s465_s7 = smov [#allocation2]   ;;  %vm350_vm4 = vcmask 58368  }
   0xd   :  { %v36_v31 = vld [vmem:[%s631_s1 + $0x60] sm:$0xff]  ;;  %v37_v32 = vld [vmem:[%s631_s1 + $0x68] sm:$0xff]  ;;  %v54_v33 = vld [vmem:[%s632_s2 + $0x30] sm:$0xff]  ;;  %v45_v35 = vpack.c.bf16 %v35_v30, %v34_v29  ;;  %427 = vmatprep.mubr.msk.bf16.mxu1 %vm464_vm3, %v463_v47  ;;  %s358_s8 = sshll.u32 %s465_s7, 4  ;;  %s359_s8 = int_to_ptr.vmem [resolvable:$true] %s358_s8 }
   0xe   :  { %121 = vperm.xlu1 %437, %v59_v24   ;;  %v55_v34 = vld [vmem:[%s632_s2 + $0x38] sm:$0xff]  ;;  %v46_v36 = vpack.c.bf16 %v37_v32, %v36_v31  ;;  %v52_v37 = vld [vmem:[%s632_s2 + $0x20] sm:$0xff]  ;;  %v53_v38 = vld [vmem:[%s632_s2 + $0x28] sm:$0xff]  ;;  %s439_s9 = scalar_lea.vmem %s359_s8, 32  ;;  %p444_p1 = scmp.lt.s32.totalorder %s359_s8, %s359_s8 }
   0xf   :  { %v38_v39 = vld [vmem:[%s631_s1 + $0x70] sm:$0xff]  ;;  %v39_v40 = vld [vmem:[%s631_s1 + $0x78] sm:$0xff]  ;;  %v48_v44 = vld [vmem:[%s632_s2] sm:$0xff]  ;;  %p440_p0 = scmp.ne.s32.totalorder %s359_s8, %s439_s9  ;;  %p445_p2 = scmp.lt.s32.totalorder %s439_s9, %s439_s9 }
  0x10   :  { %106 = vperm.xlu0 %436, %v56_v27   ;;  %v50_v41 = vld [vmem:[%s632_s2 + $0x10] sm:$0xff]  ;;  %v51_v42 = vld [vmem:[%s632_s2 + $0x18] sm:$0xff]  ;;  %v47_v43 = vpack.c.bf16 %v39_v40, %v38_v39  ;;  %v49_v45 = vld [vmem:[%s632_s2 + $0x8] sm:$0xff] }
  0x11   :  { %400 = vmatmul.mubr.msk.bf16.gmra.mxu0 %vm149_vm2, %v43_v25  ;;  %v304_v46 = vld [vmem:[%s634_s4] sm:$0x3]  ;;  %p446_p3 = por %p445_p2, %p444_p1 }
  0x12   :  { %403 = vmatprep.mubr.msk.bf16.mxu0 %vm149_vm2, %v44_v26  ;;  %111 = vperm.xlu1 %437, %v57_v28  }
  0x13   :  { %p447_p4 = pnand %p446_p3, %p440_p0 }
  0x14   :  { %96 = vperm.xlu0 %436, %v54_v33  }
  0x16   :  { %101 = vperm.xlu1 %437, %v55_v34  }
  0x18   :  { %86 = vperm.xlu0 %436, %v52_v37  }
  0x19   :  { %404 = vmatmul.mubr.msk.bf16.gmra.mxu0 %vm149_vm2, %v45_v35 }
  0x1a   :  { %407 = vmatprep.mubr.msk.bf16.mxu0 %vm149_vm2, %v46_v36  ;;  %91 = vperm.xlu1 %437, %v53_v38  }
  0x1c   :  { %76 = vperm.xlu0 %436, %v50_v41  }
  0x1e   :  { %81 = vperm.xlu1 %437, %v51_v42  }
  0x20   :  { %66 = vperm.xlu0 %436, %v48_v44  }
  0x21   :  { %408 = vmatmul.mubr.msk.bf16.gmra.mxu0 %vm149_vm2, %v47_v43 }
  0x22   :  { %71 = vperm.xlu1 %437, %v49_v45  }
  0x24   :  { %307 = vperm.xlu0 %436, %v304_v46  }
  0x7f   :  { %v137_v54 = vpop.permute.xlu0 %136 }
  0x81   :  { %v127_v52 = vpop.permute.xlu1 %126 }
  0x83   :  { %v142_v59 = vpop.permute.xlu0 %141 }
  0x85   :  { %v132_v57 = vpop.permute.xlu1 %131 }
  0x87   :  { %v117_v0 = vpop.permute.xlu0 %116 }
  0x89   :  { %v122_v62 = vpop.permute.xlu1 %121 }
  0x8b   :  { %v107_v6 = vpop.permute.xlu0 %106 }
  0x8d   :  { %v112_v3 = vpop.permute.xlu1 %111 }
  0x8f   :  { %v97_v18 = vpop.permute.xlu0 %96 }
  0x91   :  { %v102_v14 = vpop.permute.xlu1 %101 }
  0x93   :  { %v87_v27 = vpop.permute.xlu0 %86 }
  0x95   :  { %v92_v24 = vpop.permute.xlu1 %91 }
  0x97   :  { %v77_v37 = vpop.permute.xlu0 %76 }
  0x99   :  { %v82_v33 = vpop.permute.xlu1 %81 }
  0x9b   :  { %v67_v46 = vpop.permute.xlu0 %66 }
  0x9d   :  { %v72_v43 = vpop.permute.xlu1 %71 }
  0xc9   :  { %v608_v48 = vpop.f32.mrf.mxu0 }
  0xca   :  { %v224_v44 = vadd.f32 %v608_v48, %v77_v37  ;;  %v294_v48 = vld [vmem:[%s633_s3] sm:$0x3] }
  0xcb   :  { %v610_v49 = vpop.f32.mrf.mxu0 }
  0xcd   :  { %v398_v50 = vpop.f32.mrf.mxu0 }
  0xce   :  { %v227_v40 = vadd.f32 %v398_v50, %v82_v33 }
  0xcf   :  { %v612_v51 = vpop.f32.mrf.mxu0 }
  0xd1   :  { %v401_v53 = vpop.f32.mrf.mxu0 }
  0xd2   :  { %v240_v31 = vadd.f32 %v401_v53, %v97_v18  ;;  %v219_v53 = vadd.f32 %v612_v51, %v72_v43 }
  0xd3   :  { %v231_v55 = vpop.f32.mrf.mxu0 }
  0xd4   :  { %v284_v38 = vmax.f32 %v240_v31, 0.0  ;;  %v232_v39 = vadd.f32 %v231_v55, %v87_v27  ;;  %v216_v55 = vadd.f32 %v610_v49, %v67_v46  ;;  %v308_v49 = vpop.permute.xlu0 %307 }
  0xd5   :  { %v402_v56 = vpop.f32.mrf.mxu0 }
  0xd6   :  { %v243_v28 = vadd.f32 %v402_v56, %v102_v14  ;;  %v282_v45 = vmax.f32 %v232_v39, 0.0  ;;  %v280_v56 = vmax.f32 %v224_v44, 0.0 }
  0xd7   :  { %v234_v58 = vpop.f32.mrf.mxu0 }
  0xd8   :  { %v285_v34 = vmax.f32 %v243_v28, 0.0  ;;  %v235_v35 = vadd.f32 %v234_v58, %v92_v24  ;;  %v278_v58 = vmax.f32 %v216_v55, 0.0 }
  0xd9   :  { %v405_v60 = vpop.f32.mrf.mxu0 }
  0xda   :  { %v256_v19 = vadd.f32 %v405_v60, %v117_v0  ;;  %v299_v41 = vpack.c.bf16 %v285_v34, %v284_v38  ;;  %v283_v42 = vmax.f32 %v235_v35, 0.0  ;;  %v295_v60 = vpack.c.bf16 %v294_v48, %v294_v48 }
  0xdb   :  { %v247_v61 = vpop.f32.mrf.mxu0 }
  0xdc   :  { %v288_v25 = vmax.f32 %v256_v19, 0.0  ;;  %v248_v26 = vadd.f32 %v247_v61, %v107_v6 }
  0xdd   :  { %v406_v63 = vpop.f32.mrf.mxu0 }
  0xde   :  { %v259_v15 = vadd.f32 %v406_v63, %v122_v62  ;;  %v286_v32 = vmax.f32 %v248_v26, 0.0 }
  0xdf   :  { %v250_v1 = vpop.f32.mrf.mxu0 }
  0xe0   :  { %v289_v21 = vmax.f32 %v259_v15, 0.0  ;;  %v251_v22 = vadd.f32 %v250_v1, %v112_v3 }
  0xe1   :  { %v409_v2 = vpop.f32.mrf.mxu0 }
  0xe2   :  { %v272_v5 = vadd.f32 %v409_v2, %v137_v54  ;;  %v301_v29 = vpack.c.bf16 %v289_v21, %v288_v25  ;;  %v287_v30 = vmax.f32 %v251_v22, 0.0  ;;  %v298_v54 = vpack.c.bf16 %v283_v42, %v282_v45 }
  0xe3   :  { %v263_v4 = vpop.f32.mrf.mxu0 }
  0xe4   :  { %v292_v10 = vmax.f32 %v272_v5, 0.0  ;;  %v264_v11 = vadd.f32 %v263_v4, %v127_v52  ;;  %v300_v36 = vpack.c.bf16 %v287_v30, %v286_v32  ;;  %v281_v52 = vmax.f32 %v227_v40, 0.0 }
  0xe5   :  { %v410_v7 = vpop.f32.mrf.mxu0 }
  0xe6   :  { %v275_v8 = vadd.f32 %v410_v7, %v142_v59  ;;  %v290_v20 = vmax.f32 %v264_v11, 0.0  ;;  %v297_v50 = vpack.c.bf16 %v281_v52, %v280_v56 }
  0xe7   :  { %v266_v9 = vpop.f32.mrf.mxu0 }
  0xe8   :  { %v293_v12 = vmax.f32 %v275_v8, 0.0  ;;  %v267_v13 = vadd.f32 %v266_v9, %v132_v57  ;;  %v279_v57 = vmax.f32 %v219_v53, 0.0 }
  0xea   :  { %v291_v16 = vmax.f32 %v267_v13, 0.0  ;;  %v303_v17 = vpack.c.bf16 %v293_v12, %v292_v10  ;;  %v296_v59 = vpack.c.bf16 %v279_v57, %v278_v58 }
  0xec   :  { %412 = vmatpush3.bf16.msra.mxu1 %v303_v17  ;;  %v302_v23 = vpack.c.bf16 %v291_v16, %v290_v20 }
  0xed   :  { %413 = vmatprep.subr.bf16.mxu1 %v463_v47 }
  0xf0   :  { %414 = vmatpush3.bf16.msra.mxu1 %v302_v23 }
  0xf1   :  { %415 = vmatprep.subr.bf16.mxu1 %v463_v47 }
  0xf4   :  { %416 = vmatpush3.bf16.msra.mxu1 %v301_v29 }
  0xf5   :  { %417 = vmatprep.subr.bf16.mxu1 %v463_v47 }
  0xf8   :  { %418 = vmatpush3.bf16.msra.mxu1 %v300_v36 }
  0xf9   :  { %419 = vmatprep.subr.bf16.mxu1 %v463_v47 }
  0xfc   :  { %420 = vmatpush3.bf16.msra.mxu1 %v299_v41 }
  0xfd   :  { %421 = vmatprep.subr.bf16.mxu1 %v463_v47 }
 0x100   :  { %422 = vmatpush3.bf16.msra.mxu1 %v298_v54 }
 0x101   :  { %423 = vmatprep.subr.bf16.mxu1 %v463_v47 }
 0x104   :  { %424 = vmatpush3.bf16.msra.mxu1 %v297_v50 }
 0x105   :  { %425 = vmatprep.subr.bf16.mxu1 %v463_v47 }
 0x108   :  { %426 = vmatpush3.bf16.msra.mxu1 %v296_v59 }
 0x10b   :  { %428 = vmatmul.mubr.bf16.vlgmr.msra.gmra.mxu1 %v295_v60 }
 0x1cb   :  { %v344_v51 = vpop.f32.mrf.mxu1 }
 0x1cc   :  { %v345_v61 = vadd.f32 %v344_v51, %v308_v49 }
 0x1cd   :  { %v429_v62 = vpop.f32.mrf.mxu1 }
 0x1ce   :  { %351 = vst.msk [vmem:[#allocation2] sm:$0x3] %vm350_vm4, %v345_v61 }
 0x1cf   :  { %v347_v63 = vpop.f32.mrf.mxu1 }
 0x1d0   :  { %450 = shalt.err (!%p447_p4)
}
 0x1d1   :  { %361 = dma.vmem_to_hbm [thread:$0]  %s359_s8, 32, %s635_s5, [#allocation3]   ;;  %v430_v47 = vpop.f32.mrf.mxu1 }
 0x1d2   :  { %459 = dma.done.wait [#allocation3], 32  }
 0x1d3   :  { %460 = vsyncadd [#allocation3], 4294967264 }
 0x1d4   :  { %365 = vsyncpa [#allocation3], 1 }

</bundles_post_ra>
